<compile_context>
chip_gen: v6e
topology: v6e:2x2x1
jax: 0.10.0
libtpu: 0.0.40
codegen_flags: <defaults>
</compile_context>

<pallas_src>
import functools
import jax
import jax.numpy as jnp
from jax.experimental import pallas as pl
from jax.experimental.pallas import tpu as pltpu

EPS = 1e-5
HI = jax.lax.Precision.HIGHEST


def _bn_train(x, gamma, beta):
    """PyTorch BatchNorm1d, training mode (batch stats, biased variance)."""
    mu = jnp.mean(x, axis=0, keepdims=True)
    var = jnp.mean((x - mu) ** 2, axis=0, keepdims=True)
    return (x - mu) * jax.lax.rsqrt(var + EPS) * gamma + beta


# ---------------------------------------------------------------------------
# Kernel 1: BN + tensor-network contraction -> S = bnw(contract(...) + pos).
# Tiny (B x d_e); run once per forward, whole arrays resident in VMEM.
# ---------------------------------------------------------------------------
def s_kernel(r_emb_ref, e_emb_ref, pos_known_ref, pos_miss_ref,
             c0_ref, g_ref, w_ref,
             bnr_g_ref, bnr_b_ref, bne_g_ref, bne_b_ref,
             bnw_g_ref, bnw_b_ref, s_ref):
    R0 = _bn_train(r_emb_ref[...], bnr_g_ref[...], bnr_b_ref[...])        # (B, d_r)
    Ek = _bn_train(e_emb_ref[...] + pos_known_ref[...],
                   bne_g_ref[...], bne_b_ref[...])                        # (B, d_e)
    # Pre-flattened cores -> 3 small matmuls (default precision, f32 accum).
    T0 = jnp.dot(R0, c0_ref[...], preferred_element_type=jnp.float32)     # (B, rf)
    G = jnp.dot(Ek, g_ref[...], preferred_element_type=jnp.float32)       # (B, rf)
    S = jnp.dot(T0 * G, w_ref[...], preferred_element_type=jnp.float32)   # (B, d_e)
    S = _bn_train(S + pos_miss_ref[...], bnw_g_ref[...], bnw_b_ref[...])
    s_ref[...] = S.astype(s_ref.dtype)                                    # bf16 out


# ---------------------------------------------------------------------------
# Kernel 2: logits = S @ E^T, streaming the pre-transposed entity table in
# lane-dense (d_e, tile_n) tiles.  One grid step per tile, axis "parallel".
# ---------------------------------------------------------------------------
def logits_kernel(s_ref, e_t_ref, o_ref):
    o_ref[...] = jax.lax.dot_general(
        s_ref[...], e_t_ref[...],
        dimension_numbers=(((1,), (0,)), ((), ())),
        preferred_element_type=jnp.float32).astype(o_ref.dtype)


# ---------------------------------------------------------------------------
# Entity-table preparation: do this ONCE (outside the jitted train/eval step)
# and reuse the returned buffer across calls.
# ---------------------------------------------------------------------------
def prepare_entity_stream(E, *, tile_n=8192, dtype=jnp.bfloat16):
    """Returns (E_t, tile_n): E_t is (d_e, n_pad) `dtype`, zero-padded, with
    n_pad a multiple of tile_n; tile_n is clamped to a multiple of 128 and so
    that there are >= 2 tiles whenever the table allows it (v7x 2 TCs)."""
    n_ent, d_e = E.shape
    tile_n = max(128, (tile_n // 128) * 128)
    n_pad128 = pl.cdiv(n_ent, 128) * 128
    max_tile = pl.cdiv(n_pad128, 256) * 128 if n_pad128 >= 256 else n_pad128
    tile_n = min(tile_n, max_tile)
    n_pad = pl.cdiv(n_ent, tile_n) * tile_n
    E_t = jnp.pad(E.astype(dtype).T, ((0, 0), (0, n_pad - n_ent)))
    return E_t, tile_n


# ---------------------------------------------------------------------------
# Wrapper
# ---------------------------------------------------------------------------
def getd_forward(params, r_idx, e_idx_known, e_stream, W=None, *, miss=2,
                 tile_n, out_dtype=jnp.float32):
    """Forward of GETD_FC_opt_pos for k=3; `miss` must be 1 or 2.
    `e_stream` is the cached (d_e, n_pad) bf16 table from prepare_entity_stream."""
    core0, core1, core2 = params['cores']   # (r01,r02,d_r),(r01,r12,d_e),(r02,r12,d_e)
    r01, r02, d_r = core0.shape
    rf = r01 * r02
    n_ent, d_e = params['E'].shape
    B = r_idx.shape[0]
    assert e_stream.shape[0] == d_e
    n_pad = e_stream.shape[1]
    assert n_pad % tile_n == 0 and n_pad >= n_ent
    num_tiles = n_pad // tile_n

    # ---- plain-JAX glue: embedding gathers + core pre-flattening -----------
    r_emb = params['R'][r_idx]              # (B, d_r)
    e_emb = params['E'][e_idx_known]        # (B, d_e)
    c0_flat = jnp.transpose(core0, (2, 0, 1)).reshape(d_r, rf)   # [A, a*r02+b]
    if miss == 2:
        known = 1
        m_known = jnp.sum(core1, axis=1)    # (r01, d_e)   bond 'c' collapsed
        m_miss = jnp.sum(core2, axis=1)     # (r02, d_e)
        g_flat = jnp.broadcast_to(m_known.T[:, :, None], (d_e, r01, r02)).reshape(d_e, rf)
        w_flat = jnp.broadcast_to(m_miss[None, :, :], (r01, r02, d_e)).reshape(rf, d_e)
    elif miss == 1:
        known = 2
        m_known = jnp.sum(core2, axis=1)    # (r02, d_e)
        m_miss = jnp.sum(core1, axis=1)     # (r01, d_e)
        g_flat = jnp.broadcast_to(m_known.T[:, None, :], (d_e, r01, r02)).reshape(d_e, rf)
        w_flat = jnp.broadcast_to(m_miss[:, None, :], (r01, r02, d_e)).reshape(rf, d_e)
    else:
        raise ValueError('k=3 model: miss must be 1 or 2')
    pos_known = params['position'][known:known + 1]    # (1, d_e)
    pos_miss = params['position'][miss:miss + 1]       # (1, d_e)

    # ---- Kernel 1: S (B, d_e), computed once, emitted in bf16 ---------------
    s_cost = pl.CostEstimate(
        flops=int(2 * B * rf * (d_r + 2 * d_e)),
        transcendentals=int(d_r + 2 * d_e),            # rsqrt of the 3 BNs
        bytes_accessed=int(4 * (B * (d_r + d_e) + rf * (d_r + 2 * d_e)) + 2 * B * d_e),
    )
    S = pl.pallas_call(
        s_kernel,
        out_shape=jax.ShapeDtypeStruct((B, d_e), jnp.bfloat16),
        cost_estimate=s_cost,
    )(r_emb, e_emb, pos_known, pos_miss, c0_flat, g_flat, w_flat,
      params['bnr_g'], params['bnr_b'], params['bne_g'], params['bne_b'],
      params['bnw_g'], params['bnw_b'])

    # ---- Kernel 2: stream the entity table, one lane-dense tile per step ----
    cost = pl.CostEstimate(
        flops=int(2 * B * n_pad * d_e),
        transcendentals=0,
        bytes_accessed=int(d_e * n_pad * e_stream.dtype.itemsize
                           + B * n_pad * jnp.dtype(out_dtype).itemsize
                           + B * d_e * 2),
    )
    logits = pl.pallas_call(
        logits_kernel,
        out_shape=jax.ShapeDtypeStruct((B, n_pad), out_dtype),
        grid=(num_tiles,),
        in_specs=[pl.BlockSpec((B, d_e), lambda j: (0, 0)),
                  # E tile: lane-dense (d_e on sublanes, tile_n on lanes).
                  # Default depth-2 pipeline; add pipeline_mode=pl.Buffered(3)
                  # only if a trace shows exposed DMA.
                  pl.BlockSpec((d_e, tile_n), lambda j: (0, j))],
        out_specs=pl.BlockSpec((B, tile_n), lambda j: (0, j)),
        compiler_params=pltpu.CompilerParams(dimension_semantics=("parallel",)),
        cost_estimate=cost,
    )(S, e_stream)

    return logits[:, :n_ent], W


# ---------------------------------------------------------------------------
# Deterministic parameter init (mirrors the module's __init__ shapes)
# ---------------------------------------------------------------------------
def init_params(key, n_ent, n_rel, d_e, d_r, rank_list, k=3):
    # edges for k=3: [(0,1),(0,2),(1,2)] with ranks (r01, r02, r12)
    r01, r02, r12 = rank_list
    ks = jax.random.split(key, 6)
    return dict(
        E=0.001 * jax.random.normal(ks[0], (n_ent, d_e), jnp.float32),
        R=0.001 * jax.random.normal(ks[1], (n_rel, d_r), jnp.float32),
        position=0.1 * jax.random.normal(ks[2], (k, d_e), jnp.float32),
        cores=(
            jax.random.uniform(ks[3], (r01, r02, d_r), jnp.float32, -0.1, 0.1),
            jax.random.uniform(ks[4], (r01, r12, d_e), jnp.float32, -0.1, 0.1),
            jax.random.uniform(ks[5], (r02, r12, d_e), jnp.float32, -0.1, 0.1),
        ),
        bnr_g=jnp.ones((1, d_r), jnp.float32), bnr_b=jnp.zeros((1, d_r), jnp.float32),
        bne_g=jnp.ones((1, d_e), jnp.float32), bne_b=jnp.zeros((1, d_e), jnp.float32),
        bnw_g=jnp.ones((1, d_e), jnp.float32), bnw_b=jnp.zeros((1, d_e), jnp.float32),
    )


# Pure-JAX reference following the torch einsum strings verbatim (k=3)
def reference_forward(params, r_idx, e_idx_known, miss=2):
    core0, core1, core2 = params['cores']
    R0 = _bn_train(params['R'][r_idx], params['bnr_g'], params['bnr_b'])
    T = jnp.einsum('zA,abA->zab', R0, core0, precision=HI)
    known = 1 if miss == 2 else 2
    Ek = params['E'][e_idx_known] + params['position'][known]
    Ek = _bn_train(Ek, params['bne_g'], params['bne_b'])
    if miss == 2:
        T = jnp.einsum('zab,acB,zB->zab', T, core1, Ek, precision=HI)
        T = jnp.einsum('zab,bcC->zabC', T, core2, precision=HI)
    else:
        T = jnp.einsum('zab,bcC,zC->zab', T, core2, Ek, precision=HI)
        T = jnp.einsum('zab,acB->zabB', T, core1, precision=HI)
    S = T.sum(axis=(1, 2))
    S = S + params['position'][miss]
    out = _bn_train(S, params['bnw_g'], params['bnw_b'])
    return jnp.dot(out, params['E'].T, precision=HI)


if __name__ == "__main__":
    n_ent, n_rel = 256, 16
    d_e = d_r = 32
    rank_list = (8, 8, 8)
    B = 8

    params = init_params(jax.random.PRNGKey(0), n_ent, n_rel, d_e, d_r, rank_list)
    kr, ke = jax.random.split(jax.random.PRNGKey(1))
    r_idx = jax.random.randint(kr, (B,), 0, n_rel, dtype=jnp.int32)
    e_idx_known = jax.random.randint(ke, (B,), 0, n_ent, dtype=jnp.int32)

    # Build the streamed entity table ONCE (bf16, transposed, padded) outside
    # the jitted step; reuse it across calls (avoids per-call cast+pad traffic).
    e_stream, tile_n = prepare_entity_stream(params['E'], tile_n=8192)
    e_stream = jax.block_until_ready(e_stream)

    fwd = jax.jit(functools.partial(getd_forward, miss=2, tile_n=tile_n))
    logits, W = fwd(params, r_idx, e_idx_known, e_stream)
    logits = jax.block_until_ready(logits)

    ref = reference_forward(params, r_idx, e_idx_known, miss=2)
    assert logits.shape == (B, n_ent)
    err = float(jnp.max(jnp.abs(logits - ref)))
    # bf16-streamed entity table + default-precision contraction vs f32
    # HIGHEST reference: expected abs error O(1e-4).
    assert jnp.allclose(logits, ref, rtol=2e-2, atol=5e-4), err
    # TODO(synk): BatchNorm is training-mode (batch stats) only; eval-mode
    # running statistics of the torch module are not reproduced.
    print("KERNEL_OK")
</pallas_src>

<mosaic_0001>
module attributes {stable_mosaic.version = 11 : i64} {
  func.func @logits_kernel(%arg0: i32, %arg1: memref<8x32xbf16, #tpu.memory_space<vmem>>, %arg2: memref<32x128xbf16, #tpu.memory_space<vmem>>, %arg3: memref<8x128xf32, #tpu.memory_space<vmem>>) attributes {dimension_semantics = [#tpu.dimension_semantics<parallel>], iteration_bounds = array<i64: 2>, scalar_prefetch = 0 : i64, scratch_operands = 0 : i64, tpu.core_type = #tpu.core_type<tc>, window_params = [{pipeline_mode = #tpu.pipeline_mode<synchronous>, transform_indices = @transform_0, window_bounds = array<i64: 8, 32>}, {transform_indices = @transform_1, window_bounds = array<i64: 32, 128>}, {transform_indices = @transform_2, window_bounds = array<i64: 8, 128>}]} {
    %c0 = arith.constant 0 : index
    %c0_0 = arith.constant 0 : index
    %0 = vector.load %arg1[%c0, %c0_0] : memref<8x32xbf16, #tpu.memory_space<vmem>>, vector<8x32xbf16>
    %c0_1 = arith.constant 0 : index
    %c0_2 = arith.constant 0 : index
    %1 = vector.load %arg2[%c0_1, %c0_2] : memref<32x128xbf16, #tpu.memory_space<vmem>>, vector<32x128xbf16>
    %cst = arith.constant dense<0.000000e+00> : vector<8x128xf32>
    %2 = tpu.matmul %0, %1, %cst {dimension_numbers = #tpu.dot_dimension_numbers<[1], [0], [0], [1], [0, 0, 1, 1], [], []>} : vector<8x32xbf16>, vector<32x128xbf16>, vector<8x128xf32> -> vector<8x128xf32>
    %c0_3 = arith.constant 0 : index
    %c0_4 = arith.constant 0 : index
    %3 = vector.load %arg3[%c0_3, %c0_4] : memref<8x128xf32, #tpu.memory_space<vmem>>, vector<8x128xf32>
    tpu.vector_store %arg3[%c0_3, %c0_4], %2 {strides = array<i32>} : memref<8x128xf32, #tpu.memory_space<vmem>>, vector<8x128xf32>,
    return
  }
  func.func @transform_0(%arg0: i32) -> (i32, i32) {
    %c0_i32 = arith.constant 0 : i32
    %c0_i32_0 = arith.constant 0 : i32
    %c0_i32_1 = arith.constant 0 : i32
    return %c0_i32, %c0_i32_0 : i32, i32
  }
  func.func @transform_1(%arg0: i32) -> (i32, i32) {
    %c0_i32 = arith.constant 0 : i32
    %c0_i32_0 = arith.constant 0 : i32
    return %c0_i32, %arg0 : i32, i32
  }
  func.func @transform_2(%arg0: i32) -> (i32, i32) {
    %c0_i32 = arith.constant 0 : i32
    %c0_i32_0 = arith.constant 0 : i32
    return %c0_i32, %arg0 : i32, i32
  }
}

module attributes {stable_mosaic.version = 11 : i64} {
  func.func @s_kernel(%arg0: memref<8x32xf32, #tpu.memory_space<vmem>>, %arg1: memref<8x32xf32, #tpu.memory_space<vmem>>, %arg2: memref<1x32xf32, #tpu.memory_space<vmem>>, %arg3: memref<1x32xf32, #tpu.memory_space<vmem>>, %arg4: memref<32x64xf32, #tpu.memory_space<vmem>>, %arg5: memref<32x64xf32, #tpu.memory_space<vmem>>, %arg6: memref<64x32xf32, #tpu.memory_space<vmem>>, %arg7: memref<1x32xf32, #tpu.memory_space<vmem>>, %arg8: memref<1x32xf32, #tpu.memory_space<vmem>>, %arg9: memref<1x32xf32, #tpu.memory_space<vmem>>, %arg10: memref<1x32xf32, #tpu.memory_space<vmem>>, %arg11: memref<1x32xf32, #tpu.memory_space<vmem>>, %arg12: memref<1x32xf32, #tpu.memory_space<vmem>>, %arg13: memref<8x32xbf16, #tpu.memory_space<vmem>>) attributes {dimension_semantics = [], scalar_prefetch = 0 : i64, scratch_operands = 0 : i64, tpu.core_type = #tpu.core_type<tc>} {
    %c0 = arith.constant 0 : index
    %c0_0 = arith.constant 0 : index
    %0 = vector.load %arg0[%c0, %c0_0] : memref<8x32xf32, #tpu.memory_space<vmem>>, vector<8x32xf32>
    %c0_1 = arith.constant 0 : index
    %c0_2 = arith.constant 0 : index
    %1 = vector.load %arg7[%c0_1, %c0_2] : memref<1x32xf32, #tpu.memory_space<vmem>>, vector<1x32xf32>
    %c0_3 = arith.constant 0 : index
    %c0_4 = arith.constant 0 : index
    %2 = vector.load %arg8[%c0_3, %c0_4] : memref<1x32xf32, #tpu.memory_space<vmem>>, vector<1x32xf32>
    %cst = arith.constant dense<0.000000e+00> : vector<32xf32>
    %3 = vector.multi_reduction <add>, %0, %cst [0] : vector<8x32xf32> to vector<32xf32>
    %4 = vector.shape_cast %3 : vector<32xf32> to vector<1x32xf32>
    %cst_5 = arith.constant 8.000000e+00 : f32
    %5 = vector.broadcast %cst_5 : f32 to vector<1x32xf32>
    %6 = arith.divf %4, %5 : vector<1x32xf32>
    %7 = vector.broadcast %6 : vector<1x32xf32> to vector<8x32xf32>
    %8 = arith.subf %0, %7 : vector<8x32xf32>
    %9 = arith.mulf %8, %8 : vector<8x32xf32>
    %cst_6 = arith.constant dense<0.000000e+00> : vector<32xf32>
    %10 = vector.multi_reduction <add>, %9, %cst_6 [0] : vector<8x32xf32> to vector<32xf32>
    %11 = vector.shape_cast %10 : vector<32xf32> to vector<1x32xf32>
    %cst_7 = arith.constant 8.000000e+00 : f32
    %12 = vector.broadcast %cst_7 : f32 to vector<1x32xf32>
    %13 = arith.divf %11, %12 : vector<1x32xf32>
    %14 = vector.broadcast %6 : vector<1x32xf32> to vector<8x32xf32>
    %15 = arith.subf %0, %14 : vector<8x32xf32>
    %cst_8 = arith.constant 9.99999974E-6 : f32
    %16 = vector.broadcast %cst_8 : f32 to vector<1x32xf32>
    %17 = arith.addf %13, %16 : vector<1x32xf32>
    %18 = math.rsqrt %17 : vector<1x32xf32>
    %19 = vector.broadcast %18 : vector<1x32xf32> to vector<8x32xf32>
    %20 = arith.mulf %15, %19 : vector<8x32xf32>
    %21 = vector.broadcast %1 : vector<1x32xf32> to vector<8x32xf32>
    %22 = arith.mulf %20, %21 : vector<8x32xf32>
    %23 = vector.broadcast %2 : vector<1x32xf32> to vector<8x32xf32>
    %24 = arith.addf %22, %23 : vector<8x32xf32>
    %c0_9 = arith.constant 0 : index
    %c0_10 = arith.constant 0 : index
    %25 = vector.load %arg1[%c0_9, %c0_10] : memref<8x32xf32, #tpu.memory_space<vmem>>, vector<8x32xf32>
    %c0_11 = arith.constant 0 : index
    %c0_12 = arith.constant 0 : index
    %26 = vector.load %arg2[%c0_11, %c0_12] : memref<1x32xf32, #tpu.memory_space<vmem>>, vector<1x32xf32>
    %27 = vector.broadcast %26 : vector<1x32xf32> to vector<8x32xf32>
    %28 = arith.addf %25, %27 : vector<8x32xf32>
    %c0_13 = arith.constant 0 : index
    %c0_14 = arith.constant 0 : index
    %29 = vector.load %arg9[%c0_13, %c0_14] : memref<1x32xf32, #tpu.memory_space<vmem>>, vector<1x32xf32>
    %c0_15 = arith.constant 0 : index
    %c0_16 = arith.constant 0 : index
    %30 = vector.load %arg10[%c0_15, %c0_16] : memref<1x32xf32, #tpu.memory_space<vmem>>, vector<1x32xf32>
    %cst_17 = arith.constant dense<0.000000e+00> : vector<32xf32>
    %31 = vector.multi_reduction <add>, %28, %cst_17 [0] : vector<8x32xf32> to vector<32xf32>
    %32 = vector.shape_cast %31 : vector<32xf32> to vector<1x32xf32>
    %cst_18 = arith.constant 8.000000e+00 : f32
    %33 = vector.broadcast %cst_18 : f32 to vector<1x32xf32>
    %34 = arith.divf %32, %33 : vector<1x32xf32>
    %35 = vector.broadcast %34 : vector<1x32xf32> to vector<8x32xf32>
    %36 = arith.subf %28, %35 : vector<8x32xf32>
    %37 = arith.mulf %36, %36 : vector<8x32xf32>
    %cst_19 = arith.constant dense<0.000000e+00> : vector<32xf32>
    %38 = vector.multi_reduction <add>, %37, %cst_19 [0] : vector<8x32xf32> to vector<32xf32>
    %39 = vector.shape_cast %38 : vector<32xf32> to vector<1x32xf32>
    %cst_20 = arith.constant 8.000000e+00 : f32
    %40 = vector.broadcast %cst_20 : f32 to vector<1x32xf32>
    %41 = arith.divf %39, %40 : vector<1x32xf32>
    %42 = vector.broadcast %34 : vector<1x32xf32> to vector<8x32xf32>
    %43 = arith.subf %28, %42 : vector<8x32xf32>
    %cst_21 = arith.constant 9.99999974E-6 : f32
    %44 = vector.broadcast %cst_21 : f32 to vector<1x32xf32>
    %45 = arith.addf %41, %44 : vector<1x32xf32>
    %46 = math.rsqrt %45 : vector<1x32xf32>
    %47 = vector.broadcast %46 : vector<1x32xf32> to vector<8x32xf32>
    %48 = arith.mulf %43, %47 : vector<8x32xf32>
    %49 = vector.broadcast %29 : vector<1x32xf32> to vector<8x32xf32>
    %50 = arith.mulf %48, %49 : vector<8x32xf32>
    %51 = vector.broadcast %30 : vector<1x32xf32> to vector<8x32xf32>
    %52 = arith.addf %50, %51 : vector<8x32xf32>
    %c0_22 = arith.constant 0 : index
    %c0_23 = arith.constant 0 : index
    %53 = vector.load %arg4[%c0_22, %c0_23] : memref<32x64xf32, #tpu.memory_space<vmem>>, vector<32x64xf32>
    %cst_24 = arith.constant dense<0.000000e+00> : vector<8x64xf32>
    %54 = tpu.matmul %24, %53, %cst_24 {dimension_numbers = #tpu.dot_dimension_numbers<[1], [0], [0], [1], [0, 0, 1, 1], [], []>} : vector<8x32xf32>, vector<32x64xf32>, vector<8x64xf32> -> vector<8x64xf32>
    %c0_25 = arith.constant 0 : index
    %c0_26 = arith.constant 0 : index
    %55 = vector.load %arg5[%c0_25, %c0_26] : memref<32x64xf32, #tpu.memory_space<vmem>>, vector<32x64xf32>
    %cst_27 = arith.constant dense<0.000000e+00> : vector<8x64xf32>
    %56 = tpu.matmul %52, %55, %cst_27 {dimension_numbers = #tpu.dot_dimension_numbers<[1], [0], [0], [1], [0, 0, 1, 1], [], []>} : vector<8x32xf32>, vector<32x64xf32>, vector<8x64xf32> -> vector<8x64xf32>
    %57 = arith.mulf %54, %56 : vector<8x64xf32>
    %c0_28 = arith.constant 0 : index
    %c0_29 = arith.constant 0 : index
    %58 = vector.load %arg6[%c0_28, %c0_29] : memref<64x32xf32, #tpu.memory_space<vmem>>, vector<64x32xf32>
    %cst_30 = arith.constant dense<0.000000e+00> : vector<8x32xf32>
    %59 = tpu.matmul %57, %58, %cst_30 {dimension_numbers = #tpu.dot_dimension_numbers<[1], [0], [0], [1], [0, 0, 1, 1], [], []>} : vector<8x64xf32>, vector<64x32xf32>, vector<8x32xf32> -> vector<8x32xf32>
    %c0_31 = arith.constant 0 : index
    %c0_32 = arith.constant 0 : index
    %60 = vector.load %arg3[%c0_31, %c0_32] : memref<1x32xf32, #tpu.memory_space<vmem>>, vector<1x32xf32>
    %61 = vector.broadcast %60 : vector<1x32xf32> to vector<8x32xf32>
    %62 = arith.addf %59, %61 : vector<8x32xf32>
    %c0_33 = arith.constant 0 : index
    %c0_34 = arith.constant 0 : index
    %63 = vector.load %arg11[%c0_33, %c0_34] : memref<1x32xf32, #tpu.memory_space<vmem>>, vector<1x32xf32>
    %c0_35 = arith.constant 0 : index
    %c0_36 = arith.constant 0 : index
    %64 = vector.load %arg12[%c0_35, %c0_36] : memref<1x32xf32, #tpu.memory_space<vmem>>, vector<1x32xf32>
    %cst_37 = arith.constant dense<0.000000e+00> : vector<32xf32>
    %65 = vector.multi_reduction <add>, %62, %cst_37 [0] : vector<8x32xf32> to vector<32xf32>
    %66 = vector.shape_cast %65 : vector<32xf32> to vector<1x32xf32>
    %cst_38 = arith.constant 8.000000e+00 : f32
    %67 = vector.broadcast %cst_38 : f32 to vector<1x32xf32>
    %68 = arith.divf %66, %67 : vector<1x32xf32>
    %69 = vector.broadcast %68 : vector<1x32xf32> to vector<8x32xf32>
    %70 = arith.subf %62, %69 : vector<8x32xf32>
    %71 = arith.mulf %70, %70 : vector<8x32xf32>
    %cst_39 = arith.constant dense<0.000000e+00> : vector<32xf32>
    %72 = vector.multi_reduction <add>, %71, %cst_39 [0] : vector<8x32xf32> to vector<32xf32>
    %73 = vector.shape_cast %72 : vector<32xf32> to vector<1x32xf32>
    %cst_40 = arith.constant 8.000000e+00 : f32
    %74 = vector.broadcast %cst_40 : f32 to vector<1x32xf32>
    %75 = arith.divf %73, %74 : vector<1x32xf32>
    %76 = vector.broadcast %68 : vector<1x32xf32> to vector<8x32xf32>
    %77 = arith.subf %62, %76 : vector<8x32xf32>
    %cst_41 = arith.constant 9.99999974E-6 : f32
    %78 = vector.broadcast %cst_41 : f32 to vector<1x32xf32>
    %79 = arith.addf %75, %78 : vector<1x32xf32>
    %80 = math.rsqrt %79 : vector<1x32xf32>
    %81 = vector.broadcast %80 : vector<1x32xf32> to vector<8x32xf32>
    %82 = arith.mulf %77, %81 : vector<8x32xf32>
    %83 = vector.broadcast %63 : vector<1x32xf32> to vector<8x32xf32>
    %84 = arith.mulf %82, %83 : vector<8x32xf32>
    %85 = vector.broadcast %64 : vector<1x32xf32> to vector<8x32xf32>
    %86 = arith.addf %84, %85 : vector<8x32xf32>
    %87 = arith.truncf %86 : vector<8x32xf32> to vector<8x32xbf16>
    %c0_42 = arith.constant 0 : index
    %c0_43 = arith.constant 0 : index
    %88 = vector.load %arg13[%c0_42, %c0_43] : memref<8x32xbf16, #tpu.memory_space<vmem>>, vector<8x32xbf16>
    tpu.vector_store %arg13[%c0_42, %c0_43], %87 {strides = array<i32>} : memref<8x32xbf16, #tpu.memory_space<vmem>>, vector<8x32xbf16>,
    return
  }
}

</mosaic_0001>

<bundles_post_ra>
// kernel: getd_forward.3
= control target key start
LH: loop header
LB: loop body
LE: loop exit
PB: predicated region body
PF: predicated region fallthrough
CT: control target
= control target key end

     0   :  { %7 = vsyncpa [#allocation4], 0  ;;  %s600_s0 = inlined_call_operand.vmem [shape: bf16[8,32], index: 0, kind: input, shape index: {}]   ;;  %s601_s1 = inlined_call_operand.vmem [shape: bf16[32,256], index: 1, kind: input, shape index: {}]   ;;  %s602_s2 = inlined_call_operand.hbm [shape: f32[8,256], index: 2, kind: output, shape index: {}]  }
   0x1   :  { %9 = vsyncpa [#allocation4 + $0x1], 0  ;;  %s488_s9 = smov 0   ;;  %s490_s10 = smov 0  }
   0x2   :  { %s492_s11 = smov 0   ;;  %s494_s12 = smov 0  }
   0x3 LB: > { %s338_s13 = sadd.s32 4294967295, %s468_s12   ;;  %s339_s14 = sadd.s32 4294967294, %s468_s12   ;;  %s468_s12 = sphi %s494_s12, %s608_s12   ;;  %s464_s11 = sphi %s492_s11, %s607_s11   ;;  %s460_s10 = sphi %s490_s10, %s606_s10   ;;  %s456_s9 = sphi %s488_s9, %s605_s9  }
   0x4   : > { %s511_s15 = sadd.s32 1, %s468_s12   ;;  %s43_s16 = sadd.s32 1, %s464_s11 }
   0x5   : > { %s40_s17 = ssub.s32 %s468_s12, %s511_s15  ;;  %p50_p0 = scmp.ne.s32.totalorder %s464_s11, %s460_s10 }
   0x6   : > { %p41_p1 = scmp.eq.s32.totalorder %s40_s17, 0  ;;  %p51_p2 = scmp.eq.s32.totalorder %s468_s12, 0 }
   0x7   : > { %p80_p3 = scmp.eq.s32.totalorder %s338_s13, 1  ;;  %p85_p4 = scmp.ne.s32.totalorder %s460_s10, %s456_s9 }
   0x8   : > { %s524_s18 = scalar_select %p41_p1, %s464_s11, %s43_s16  }
   0x9   : > { %p52_p5 = por %p51_p2, %p50_p0  ;;  %p526_p6 = por %p80_p3, %p50_p0 }
   0xa   : > { %p86_p7 = scmp.eq.s32.totalorder %s339_s14, 1  ;;  %p341_p9 = scmp.ge.s32.totalorder %s468_s12, 2 }
   0xc   : > { %p530_p8 = por %p86_p7, %p85_p4  ;;  %105 = sbr.rel (%p341_p9) target bundleno = 23 (0x17), region = 20 }
  0x11   : > { %108 = sbr.rel (!%p52_p5) target bundleno = 23 (0x17), region = 24  ;;  %s110_s21 = sand.u32 (%p52_p5), 1, %s464_s11  }
  0x12   : > { %s343_s22 = sshll.u32 (%p52_p5), %s468_s12, 2  ;;  %s342_s23 = sshll.u32 (%p52_p5), %s110_s21, 4 }
  0x13   : > { %s114_s26 = scalar_lea.vmem (%p52_p5), %s601_s1, %s343_s22  ;;  %s112_s27 = scalar_lea.vmem (%p52_p5), [#allocation2], %s342_s23 }
  0x14   : > { %v131_v0 = vld [vmem:[%s114_s26] sm:$0xf] (%p52_p5)  ;;  %v133_v1 = vld [vmem:[%s114_s26 + $0x8] sm:$0xf] (%p52_p5)  ;;  %v135_v2 = vld [vmem:[%s114_s26 + $0x10] sm:$0xf] (%p52_p5) }
  0x15   : > { %132 = vst [vmem:[%s112_s27] sm:$0xf] (%p52_p5), %v131_v0  ;;  %134 = vst [vmem:[%s112_s27 + $0x4] sm:$0xf] (%p52_p5), %v133_v1  ;;  %v137_v3 = vld [vmem:[%s114_s26 + $0x18] sm:$0xf] (%p52_p5) }
  0x16   : > { %136 = vst [vmem:[%s112_s27 + $0x8] sm:$0xf] %v135_v2  ;;  %138 = vst [vmem:[%s112_s27 + $0xc] sm:$0xf] %v137_v3 }
  0x17 PF: > { %p344_p10 = scmp.ge.s32.totalorder %s468_s12, 1  ;;  %p169_p11 = scmp.lt.s32.totalorder %s468_s12, 3 }
  0x19   : > { %p170_p12 = pnand %p344_p10, %p169_p11 }
  0x1a   : > { %s545_s28 = sand.u32 (!%p170_p12), 1, %s460_s10   ;;  %s351_s8 = sshll.u32 (!%p170_p12), %s338_s13, 7 }
  0x1b   : > { %173 = sbr.rel (%p170_p12) target bundleno = 250 (0xfa), region = 65  ;;  %s345_s29 = sshll.u32 (!%p170_p12), %s545_s28, 4 }
  0x1c   : > { %s178_s30 = scalar_lea.vmem (!%p170_p12), [#allocation2], %s345_s29  ;;  %s346_s5 = sshll.u32 (!%p170_p12), %s545_s28, 3 }
  0x1d   : > { %s196_s6 = scalar_lea.vmem (!%p170_p12), [#allocation3], %s346_s5  ;;  %s559_s17 = scalar_lea.hbm (!%p170_p12), %s602_s2, %s351_s8 }
  0x1e   : > { %s274_s7 = sshll.u32 (!%p170_p12), %s196_s6, 4  ;;  %s261_s21 = scalar_lea.sflag (!%p170_p12), [#allocation4], %s545_s28  ;;  %s554_s7 = int_to_ptr.vmem [resolvable:$true] %s274_s7 }
  0x1f   : > { %s408_s22 = scalar_lea.vmem (!%p170_p12), %s554_s7, 128  ;;  %s472_s13 = smov (!%p170_p12), [#allocation3]  }
  0x20   : > { %v470_v4 = vmov 0.0   ;;  %vm471_vm0 = vmmov 0   ;;  %v406_v5 = vld [vmem:[%s178_s30 + $0x8] sm:$0xff]   ;;  %v407_v6 = vld [vmem:[%s178_s30] sm:$0xff]   ;;  %vm215_vm1 = vcmask 261120   ;;  %p409_p13 = scmp.ne.s32.totalorder %s554_s7, %s408_s22  ;;  %s412_s23 = sshll.u32 %s472_s13, 4  ;;  %s413_s23 = int_to_ptr.vmem [resolvable:$false] %s412_s23 }
  0x21   : > { %357 = vmatprep.subr.bf16.mxu0 %v470_v4  ;;  %361 = vmatprep.mubr.msk.bf16.mxu0 %vm471_vm0, %v470_v4  ;;  %v198_v7 = vld [vmem:[%s600_s0] sm:$0xf]  ;;  %s414_s24 = scalar_lea.vmem %s413_s23, 256  ;;  %p415_p2 = scmp.lt.s32.totalorder %s554_s7, %s413_s23 }
  0x22   : > { %358 = vmatpush3.bf16.msra.mxu0 %v406_v5  ;;  %p410_p0 = pnand %p409_p13, %p526_p6  ;;  %p416_p3 = scmp.lt.s32.totalorder %s414_s24, %s408_s22 }
  0x23   : > { %359 = vmatprep.subr.bf16.mxu0 %v470_v4 }
  0x24   : > { %p411_p1 = pneg %p410_p0  ;;  %p417_p4 = por %p416_p3, %p415_p2 }
  0x26   : > { %360 = vmatpush3.bf16.msra.mxu0 %v407_v6  ;;  %p418_p5 = pnand %p417_p4, %p411_p1 }
  0x29   : > { %362 = vmatmul.mubr.msk.bf16.vlgmr.msra.gmra.mxu0 %vm215_vm1, %v198_v7 }
  0xe9   : > { %v253_v8 = vpop.f32.mrf.mxu0 }
  0xea   : > { %259 = vst [vmem:[%s196_s6] sm:$0xff] %v253_v8 }
  0xeb   : > { %v363_v9 = vpop.f32.mrf.mxu0 }
  0xec   : > { %421 = shalt.err (!%p418_p5)
}
  0xed   : > { %s422_s25 = scalar_lea.hbm %s559_s17, 128  ;;  %s426_s28 = scalar_lea.hbm %s602_s2, 256 }
  0xee   : > { %p423_p7 = scmp.ne.s32.totalorder %s559_s17, %s422_s25  ;;  %p427_p12 = scmp.lt.s32.totalorder %s559_s17, %s602_s2 }
  0xef   : > { %p428_p13 = scmp.lt.s32.totalorder %s426_s28, %s422_s25 }
  0xf0   : > { %p424_p10 = pnand %p423_p7, %p526_p6 }
  0xf1   : > { %p429_p0 = por %p428_p13, %p427_p12 }
  0xf2   : > { %p425_p11 = pneg %p424_p10 }
  0xf4   : > { %p430_p1 = pnand %p429_p0, %p425_p11 }
  0xf6   : > { %433 = shalt.err (!%p430_p1)
}
  0xf7   : > { %365 = dma.vmem_to_hbm [thread:$0]  (%p526_p6), %s554_s7, 128, %s559_s17, %s261_s21   ;;  %v256_v10 = vpop.f32.mrf.mxu0 }
  0xf9   : > { %v364_v11 = vpop.f32.mrf.mxu0 }
  0xfa PF: > { %s286_s3 = sand.u32 1, %s456_s9   ;;  %p368_p2 = pnand %p341_p9, %p530_p8 }
  0xfb   : > { %s287_s4 = scalar_lea.sflag [#allocation4], %s286_s3 }
  0xfc   : > { %p369_p3 = pneg %p368_p2 }
  0xfe   : > { %451 = dma.done.wait (%p369_p3), %s287_s4, 128  }
  0xff   : > { %453 = vsyncadd (%p369_p3), %s287_s4, 4294967168  ;;  %p12_p6 = scmp.ge.s32.totalorder %s511_s15, 4   ;;  %s605_s9 = smov %s460_s10 }
 0x100   : > { %s606_s10 = smov %s464_s11  ;;  %s607_s11 = smov %s524_s18 }
 0x101   : > { %s608_s12 = smov %s511_s15  ;;  %14 = sbr.rel (!%p12_p6) target bundleno = 3 (0x3), region = 109 }
 0x106   :  { %292 = vsyncpa [#allocation4], 1 }
 0x107   :  { %294 = vsyncpa [#allocation4 + $0x1], 1 }

// kernel: getd_forward.2
= control target key start
LH: loop header
LB: loop body
LE: loop exit
PB: predicated region body
PF: predicated region fallthrough
CT: control target
= control target key end

     0   :  { %vm47_vm0 = vcmask 261120   ;;  %v497_v0 = vmov 0.0   ;;  %vm498_vm1 = vmmov 0   ;;  %vm300_vm2 = vcmask 523264   ;;  %s680_s4 = inlined_call_operand.vmem [shape: f32[32,64], index: 4, kind: input, shape index: {}]   ;;  %s681_s0 = inlined_call_operand.vmem [shape: f32[8,32], index: 0, kind: input, shape index: {}]   ;;  %s682_s1 = inlined_call_operand.vmem [shape: f32[8,32], index: 1, kind: input, shape index: {}]   ;;  %s683_s2 = inlined_call_operand.vmem [shape: f32[1,32], index: 2, kind: input, shape index: {}]   ;;  %s684_s6 = inlined_call_operand.vmem [shape: f32[64,32], index: 6, kind: input, shape index: {}]   ;;  %s685_s7 = inlined_call_operand.vmem [shape: f32[1,32], index: 7, kind: input, shape index: {}]   ;;  %s686_s8 = inlined_call_operand.vmem [shape: f32[1,32], index: 8, kind: input, shape index: {}]   ;;  %s687_s5 = inlined_call_operand.vmem [shape: f32[32,64], index: 5, kind: input, shape index: {}]   ;;  %s688_s9 = inlined_call_operand.vmem [shape: f32[1,32], index: 9, kind: input, shape index: {}]   ;;  %s689_s10 = inlined_call_operand.vmem [shape: f32[1,32], index: 10, kind: input, shape index: {}]   ;;  %s690_s3 = inlined_call_operand.vmem [shape: f32[1,32], index: 3, kind: input, shape index: {}]   ;;  %s691_s11 = inlined_call_operand.vmem [shape: f32[1,32], index: 11, kind: input, shape index: {}]   ;;  %s692_s12 = inlined_call_operand.vmem [shape: f32[1,32], index: 12, kind: input, shape index: {}]   ;;  %s693_s13 = inlined_call_operand.vmem [shape: bf16[8,32], index: 13, kind: output, shape index: {}]  }
   0x1   :  { %448 = vmatprep.subr.mxu1 %v497_v0  ;;  %v133_v1 = vld [vmem:[%s680_s4 + $0x18] sm:$0xff]  ;;  %v132_v2 = vld [vmem:[%s680_s4 + $0x10] sm:$0xff]  ;;  %456 = vmatprep.mubr.msk.f32.mxu1 %vm498_vm1, %v497_v0  ;;  %v44_v3 = vld [vmem:[%s681_s0] sm:$0xff]  ;;  %vm412_vm3 = vcmask 257024  }
   0x2   :  { %449 = vmatpush3.msra.mxu1 %v133_v1  ;;  %470 = vmatprep.subr.mxu0 %v497_v0  ;;  %v131_v4 = vld [vmem:[%s680_s4 + $0x8] sm:$0xff]  ;;  %v48_v5 = vsel %vm47_vm0, %v44_v3, 0.0  ;;  %v84_v7 = vld [vmem:[%s682_s1] sm:$0xff]  ;;  %v292_v12 = vld [vmem:[%s684_s6 + $0x38] sm:$0xff] }
   0x3   :  { %450 = vmatprep.subr.mxu1 %v497_v0  ;;  %486 = vmatprep.mubr.msk.f32.mxu0 %vm498_vm1, %v497_v0  ;;  %v49_v6 = vrot.slane %v48_v5, 4  ;;  %v130_v8 = vld [vmem:[%s680_s4] sm:$0xff]  ;;  %v291_v13 = vld [vmem:[%s684_s6 + $0x30] sm:$0xff]  ;;  %v290_v16 = vld [vmem:[%s684_s6 + $0x28] sm:$0xff] }
   0x4   :  { %451 = vmatpush3.msra.mxu1 %v132_v2  ;;  %v420_v9 = vld [vmem:[%s683_s2] ss:$0 sm:$0xff]  ;;  %471 = vmatpush3.msra.mxu0 %v292_v12  ;;  %v210_v57 = vld [vmem:[%s687_s5 + $0x18] sm:$0xff]  ;;  %v209_v60 = vld [vmem:[%s687_s5 + $0x10] sm:$0xff] }
   0x5   :  { %452 = vmatprep.subr.mxu1 %v497_v0  ;;  %v50_v10 = vadd.f32 %v49_v6, %v48_v5  ;;  %v92_v11 = vadd.f32 %v420_v9, %v84_v7  ;;  %472 = vmatprep.subr.mxu0 %v497_v0  ;;  %v418_v51 = vld [vmem:[%s685_s7] ss:$0 sm:$0xff]  ;;  %v208_v63 = vld [vmem:[%s687_s5 + $0x8] sm:$0xff]  ;;  %v287_v5 = vld [vmem:[%s684_s6 + $0x10] sm:$0xff] }
   0x6   :  { %453 = vmatpush3.msra.mxu1 %v131_v4  ;;  %473 = vmatpush3.msra.mxu0 %v291_v13  ;;  %v419_v53 = vld [vmem:[%s686_s8] ss:$0 sm:$0xff]  ;;  %v288_v4 = vld [vmem:[%s684_s6 + $0x18] sm:$0xff]  ;;  %v286_v6 = vld [vmem:[%s684_s6 + $0x8] sm:$0xff] }
   0x7   :  { %454 = vmatprep.subr.mxu1 %v497_v0  ;;  %v51_v14 = vrot.slane %v50_v10, 2  ;;  %v95_v15 = vsel %vm47_vm0, %v92_v11, 0.0  ;;  %474 = vmatprep.subr.mxu0 %v497_v0  ;;  %v421_v58 = vld [vmem:[%s688_s9] ss:$0 sm:$0xff] }
   0x8   :  { %455 = vmatpush3.msra.mxu1 %v130_v8  ;;  %v96_v17 = vrot.slane %v95_v15, 4  ;;  %475 = vmatpush3.msra.mxu0 %v290_v16  ;;  %v422_v61 = vld [vmem:[%s689_s10] ss:$0 sm:$0xff] }
   0x9   :  { %459 = vmatprep.subr.mxu1 %v497_v0  ;;  %v52_v18 = vadd.f32 %v51_v14, %v50_v10  ;;  %476 = vmatprep.subr.mxu0 %v497_v0  ;;  %v207_v1 = vld [vmem:[%s687_s5] sm:$0xff] }
   0xa   :  { %v97_v19 = vadd.f32 %v96_v17, %v95_v15  ;;  %v285_v7 = vld [vmem:[%s684_s6] sm:$0xff] }
   0xb   :  { %v53_v20 = vrot.slane %v52_v18, 1  ;;  %v425_v13 = vld [vmem:[%s690_s3] ss:$0 sm:$0xff] }
   0xc   :  { %v98_v21 = vrot.slane %v97_v19, 2 }
   0xd   :  { %v54_v22 = vadd.f32 %v53_v20, %v52_v18 }
   0xe   :  { %v99_v23 = vadd.f32 %v98_v21, %v97_v19 }
   0xf   :  { %v56_v24 = vmul.f32 0.125, %v54_v22 }
  0x10   :  { %v100_v25 = vrot.slane %v99_v23, 1 }
  0x11   :  { %v57_v26 = vsub.f32 %v44_v3, %v56_v24  ;;  %v289_v3 = vld [vmem:[%s684_s6 + $0x20] sm:$0xff] }
  0x12   :  { %v101_v27 = vadd.f32 %v100_v25, %v99_v23  ;;  %477 = vmatpush3.msra.mxu0 %v289_v3 }
  0x13   :  { %v58_v28 = vmul.f32 %v57_v26, %v57_v26  ;;  %478 = vmatprep.subr.mxu0 %v497_v0 }
  0x14   :  { %v102_v29 = vmul.f32 0.125, %v101_v27  ;;  %479 = vmatpush3.msra.mxu0 %v288_v4 }
  0x15   :  { %v59_v30 = vsel %vm47_vm0, %v58_v28, 0.0  ;;  %480 = vmatprep.subr.mxu0 %v497_v0 }
  0x16   :  { %v60_v31 = vrot.slane %v59_v30, 4  ;;  %v103_v32 = vsub.f32 %v92_v11, %v102_v29  ;;  %481 = vmatpush3.msra.mxu0 %v287_v5 }
  0x17   :  { %482 = vmatprep.subr.mxu0 %v497_v0 }
  0x18   :  { %v61_v33 = vadd.f32 %v60_v31, %v59_v30  ;;  %v104_v34 = vmul.f32 %v103_v32, %v103_v32  ;;  %483 = vmatpush3.msra.mxu0 %v286_v6 }
  0x19   :  { %484 = vmatprep.subr.mxu0 %v497_v0 }
  0x1a   :  { %v62_v35 = vrot.slane %v61_v33, 2  ;;  %v105_v36 = vsel %vm47_vm0, %v104_v34, 0.0  ;;  %485 = vmatpush3.msra.mxu0 %v285_v7 }
  0x1b   :  { %v106_v37 = vrot.slane %v105_v36, 4 }
  0x1c   :  { %v63_v38 = vadd.f32 %v62_v35, %v61_v33 }
  0x1d   :  { %v107_v39 = vadd.f32 %v106_v37, %v105_v36  ;;  %v427_v36 = vld [vmem:[%s691_s11] ss:$0 sm:$0xff] }
  0x1e   :  { %v64_v40 = vrot.slane %v63_v38, 1 }
  0x1f   :  { %v108_v41 = vrot.slane %v107_v39, 2 }
  0x20   :  { %v65_v42 = vadd.f32 %v64_v40, %v63_v38  ;;  %v428_v38 = vld [vmem:[%s692_s12] ss:$0 sm:$0xff] }
  0x21   :  { %v109_v43 = vadd.f32 %v108_v41, %v107_v39 }
  0x22   :  { %v66_v44 = vmul.f32 0.125, %v65_v42 }
  0x23   :  { %v110_v45 = vrot.slane %v109_v43, 1 }
  0x24   :  { %v67_v46 = vadd.f32 1e-05, %v66_v44 }
  0x25   :  { %v111_v47 = vadd.f32 %v110_v45, %v109_v43 }
  0x26   :  { %491 = vrsqrt.f32 %v67_v46 }
  0x27   :  { %v112_v48 = vmul.f32 0.125, %v111_v47 }
  0x29   :  { %v113_v49 = vadd.f32 1e-05, %v112_v48 }
  0x2b   :  { %493 = vrsqrt.f32 %v113_v49 }
  0x33   :  { %v492_v50 = vpop.eup %491 }
  0x34   :  { %v69_v52 = vmul.f32 %v492_v50, %v57_v26 }
  0x36   :  { %v76_v54 = vmul.f32 %v418_v51, %v69_v52 }
  0x38   :  { %v494_v55 = vpop.eup %493  ;;  %v83_v56 = vadd.f32 %v419_v53, %v76_v54 }
  0x39   :  { %v115_v59 = vmul.f32 %v494_v55, %v103_v32 }
  0x3a   :  { %457 = vmatmul.mubr.msk.f32.vlgmr.msra.gmra.mxu1 %vm47_vm0, %v83_v56 }
  0x3b   :  { %460 = vmatpush3.msra.mxu1 %v210_v57  ;;  %467 = vmatprep.mubr.msk.f32.mxu1 %vm498_vm1, %v497_v0  ;;  %v122_v62 = vmul.f32 %v421_v58, %v115_v59 }
  0x3c   :  { %461 = vmatprep.subr.mxu1 %v497_v0 }
  0x3d   :  { %462 = vmatpush3.msra.mxu1 %v209_v60  ;;  %v129_v2 = vadd.f32 %v422_v61, %v122_v62 }
  0x3e   :  { %463 = vmatprep.subr.mxu1 %v497_v0 }
  0x3f   :  { %464 = vmatpush3.msra.mxu1 %v208_v63 }
  0x40   :  { %465 = vmatprep.subr.mxu1 %v497_v0 }
  0x41   :  { %466 = vmatpush3.msra.mxu1 %v207_v1 }
  0x42   :  { %468 = vmatmul.mubr.msk.f32.vlgmr.msra.gmra.mxu1 %vm47_vm0, %v129_v2 }
  0xfa   :  { %v203_v8 = vpop.f32.mrf.mxu1 }
  0xfc   :  { %v458_v9 = vpop.f32.mrf.mxu1 }
 0x102   :  { %v280_v10 = vpop.f32.mrf.mxu1 }
 0x103   :  { %v284_v11 = vmul.f32 %v280_v10, %v203_v8 }
 0x104   :  { %v469_v12 = vpop.f32.mrf.mxu1 }
 0x105   :  { %487 = vmatmul.mubr.msk.f32.vlgmr.msra.gmra.mxu0 %vm300_vm2, %v284_v11 }
 0x1c5   :  { %v370_v14 = vpop.f32.mrf.mxu0 }
 0x1c6   :  { %v371_v15 = vadd.f32 %v425_v13, %v370_v14 }
 0x1c7   :  { %v488_v16 = vpop.f32.mrf.mxu0 }
 0x1c8   :  { %v376_v0 = vsel %vm47_vm0, %v371_v15, 0.0 }
 0x1c9   :  { %v377_v17 = vrot.slane %v376_v0, 4 }
 0x1cb   :  { %v378_v18 = vadd.f32 %v377_v17, %v376_v0 }
 0x1cd   :  { %v379_v19 = vrot.slane %v378_v18, 2 }
 0x1cf   :  { %v380_v20 = vadd.f32 %v379_v19, %v378_v18 }
 0x1d1   :  { %v381_v21 = vrot.slane %v380_v20, 1 }
 0x1d3   :  { %v382_v22 = vadd.f32 %v381_v21, %v380_v20 }
 0x1d5   :  { %v383_v23 = vmul.f32 0.125, %v382_v22 }
 0x1d7   :  { %v384_v24 = vsub.f32 %v371_v15, %v383_v23 }
 0x1d9   :  { %v385_v25 = vmul.f32 %v384_v24, %v384_v24 }
 0x1db   :  { %v386_v26 = vsel %vm47_vm0, %v385_v25, 0.0 }
 0x1dc   :  { %v387_v27 = vrot.slane %v386_v26, 4 }
 0x1de   :  { %v388_v28 = vadd.f32 %v387_v27, %v386_v26 }
 0x1e0   :  { %v389_v29 = vrot.slane %v388_v28, 2 }
 0x1e2   :  { %v390_v30 = vadd.f32 %v389_v29, %v388_v28 }
 0x1e4   :  { %v391_v31 = vrot.slane %v390_v30, 1 }
 0x1e6   :  { %v392_v32 = vadd.f32 %v391_v31, %v390_v30 }
 0x1e8   :  { %v393_v33 = vmul.f32 0.125, %v392_v32 }
 0x1ea   :  { %v394_v34 = vadd.f32 1e-05, %v393_v33 }
 0x1ec   :  { %495 = vrsqrt.f32 %v394_v34 }
 0x1f9   :  { %v496_v35 = vpop.eup %495 }
 0x1fa   :  { %v396_v37 = vmul.f32 %v496_v35, %v384_v24 }
 0x1fc   :  { %v403_v39 = vmul.f32 %v427_v36, %v396_v37 }
 0x1fe   :  { %v410_v40 = vadd.f32 %v428_v38, %v403_v39 }
 0x200   :  { %v411_v41 = vpack.c.bf16 %v410_v40, %v410_v40 }
 0x202   :  { %413 = vst.msk [vmem:[%s693_s13] sm:$0xf] %vm412_vm3, %v411_v41 }

</bundles_post_ra>
